<compile_context>
chip_gen: v7x
topology: tpu7x:2x2x1
jax: 0.10.0
libtpu: 0.0.40
codegen_flags: <defaults>
</compile_context>

<pallas_src>
import math

import jax
import jax.numpy as jnp
from jax.experimental import pallas as pl
from jax.experimental.pallas import tpu as pltpu

INPUT_SIZE = 7 * 7 * 3   # 147
HIDDEN = 64
H_PAD = 128              # padded hidden dim     (64 -> 128), lane-dense
A_PAD = 128              # padded action columns (7  -> 128), lane-dense output


def actor_rapid_kernel(x_ref, w1_ref, w23_ref, b_ref, out_ref):
    # fc1: Linear(147 -> H_PAD) + ReLU. x/w1 are bf16 (native MXU path); the
    # accumulation and everything downstream is f32.
    h1 = jnp.dot(x_ref[...], w1_ref[...], preferred_element_type=jnp.float32)
    h1 = jnp.maximum(h1 + b_ref[0:1, :], 0.0)
    # fc2: Linear(H_PAD -> H_PAD) + ReLU (f32; w23 is VMEM-resident, MXU has slack)
    h2 = jnp.dot(h1, w23_ref[:, 0:H_PAD], preferred_element_type=jnp.float32)
    h2 = jnp.maximum(h2 + b_ref[1:2, :], 0.0)
    # actor head: Linear(H_PAD -> A_PAD). Padded action columns have zero weight
    # columns and a -inf bias, so they come out as -inf and vanish in the softmax.
    logits = jnp.dot(h2, w23_ref[:, H_PAD:H_PAD + A_PAD],
                     preferred_element_type=jnp.float32) + b_ref[2:3, :]
    # log_softmax over the lane axis (padded cols contribute exp(-inf) = 0).
    m = jnp.max(logits, axis=-1, keepdims=True)
    shifted = logits - m
    lse = jnp.log(jnp.sum(jnp.exp(shifted), axis=-1, keepdims=True))
    out_ref[...] = shifted - lse


def make_params(key, input_size=INPUT_SIZE, hidden=HIDDEN, action_space=7):
    """Orthogonal init matching the module's __init__ scheme (weights as [in, out])."""
    k1, k2, k3 = jax.random.split(key, 3)
    relu_gain = math.sqrt(2.0)  # nn.init.calculate_gain('relu')
    ortho_relu = jax.nn.initializers.orthogonal(scale=relu_gain)
    ortho_one = jax.nn.initializers.orthogonal(scale=1.0)
    w1 = ortho_relu(k1, (input_size, hidden), jnp.float32)
    b1 = jnp.zeros((hidden,), jnp.float32)
    w2 = ortho_relu(k2, (hidden, hidden), jnp.float32)
    b2 = jnp.zeros((hidden,), jnp.float32)
    w3 = ortho_one(k3, (hidden, action_space), jnp.float32)
    b3 = jnp.zeros((action_space,), jnp.float32)
    return (w1, b1, w2, b2, w3, b3)


def prepare_packed_params(params):
    """One-off host-side packing: pad hidden/action dims to 128, pack into 3 operands."""
    w1, b1, w2, b2, w3, b3 = params
    a = w3.shape[1]
    assert a <= A_PAD and w2.shape[0] <= H_PAD and w1.shape[1] <= H_PAD
    # w1 keeps the real K=147 (no K pad -> no wrapper-side x pad); bf16 for the MXU.
    w1p = jnp.zeros((w1.shape[0], H_PAD), jnp.float32).at[:, :w1.shape[1]].set(w1)
    w1p = w1p.astype(jnp.bfloat16)
    # [w2 | w3] padded to (H_PAD, H_PAD + A_PAD), kept in f32 (resident, tiny).
    w2p = jnp.zeros((H_PAD, H_PAD), jnp.float32).at[:w2.shape[0], :w2.shape[1]].set(w2)
    w3p = jnp.zeros((H_PAD, A_PAD), jnp.float32).at[:w3.shape[0], :a].set(w3)
    w23 = jnp.concatenate([w2p, w3p], axis=1)
    # Stacked biases; actor-bias row gets -inf in the padded tail so padded logits
    # are -inf without any in-kernel masking.
    b_pack = jnp.zeros((3, H_PAD), jnp.float32)
    b_pack = b_pack.at[0, :b1.shape[-1]].set(b1.reshape(-1))
    b_pack = b_pack.at[1, :b2.shape[-1]].set(b2.reshape(-1))
    b_row2 = jnp.full((A_PAD,), -jnp.inf, jnp.float32).at[:a].set(b3.reshape(-1))
    b_pack = b_pack.at[2, :].set(b_row2)
    return w1p, w23, b_pack, a


def _round_up(v, m):
    return -(-v // m) * m


def actor_rapid_forward(obs_image, packed):
    """obs_image: [B, 7, 7, 3] -> log-probabilities [B, action_space]."""
    w1p, w23, b_pack, action_space = packed
    B = obs_image.shape[0]
    # torch .view(B, -1); bf16 halves the dominant HBM stream (x read).
    x = obs_image.reshape(B, -1).astype(jnp.bfloat16)        # [B, 147]

    # Batch tile: no row padding. Multiple of 8 (or the full B for tiny batches);
    # target >=2 grid steps so ("parallel",) can shard across both v7x TCs;
    # cap at 1024 (~86% of HBM roofline; VMEM use stays tiny).
    if B <= 8:
        tb = B
    else:
        tb = min(1024, max(8, _round_up(-(-B // 2), 8)))
    grid = -(-B // tb)   # cdiv; boundary block (if any) is masked by Pallas

    out = pl.pallas_call(
        actor_rapid_kernel,
        out_shape=jax.ShapeDtypeStruct((B, A_PAD), jnp.float32),
        grid=(grid,),
        in_specs=[
            pl.BlockSpec((tb, INPUT_SIZE), lambda i: (i, 0)),          # x tile (full K)
            pl.BlockSpec((INPUT_SIZE, H_PAD), lambda i: (0, 0)),       # w1 (resident)
            pl.BlockSpec((H_PAD, H_PAD + A_PAD), lambda i: (0, 0)),    # [w2|w3] (resident)
            pl.BlockSpec((3, H_PAD), lambda i: (0, 0)),                # biases (resident)
        ],
        out_specs=pl.BlockSpec((tb, A_PAD), lambda i: (i, 0)),
        compiler_params=pltpu.CompilerParams(
            dimension_semantics=("parallel",)),
    )(x, w1p, w23, b_pack)
    return out[:, :action_space]


def reference_forward(obs_image, params):
    """Pure-JAX f32 reference of the PyTorch forward for a sanity check."""
    w1, b1, w2, b2, w3, b3 = params
    x = obs_image.reshape(obs_image.shape[0], -1)
    x = jnp.maximum(x @ w1 + b1, 0.0)
    x = jnp.maximum(x @ w2 + b2, 0.0)
    logits = x @ w3 + b3
    return jax.nn.log_softmax(logits, axis=1)


if __name__ == "__main__":
    key = jax.random.PRNGKey(0)
    k_param, k_obs = jax.random.split(key)

    B, action_space = 2, 7
    params = make_params(k_param, action_space=action_space)
    packed = prepare_packed_params(params)
    obs_image = jax.random.uniform(k_obs, (B, 7, 7, 3), jnp.float32)

    log_probs = jax.block_until_ready(actor_rapid_forward(obs_image, packed))

    ref = reference_forward(obs_image, params)
    assert log_probs.shape == (B, action_space)
    assert jnp.all(jnp.isfinite(log_probs)), "non-finite log-probs"
    # Tolerance loosened vs f32-only version because x/w1 are streamed in bf16.
    assert jnp.allclose(log_probs, ref, atol=5e-2, rtol=5e-2), "mismatch vs reference"
    # Categorical(logits=log_softmax(x)): returning the log-probs (dist logits).
    print("KERNEL_OK")
</pallas_src>

<mosaic_0001>
module attributes {stable_mosaic.version = 11 : i64} {
  func.func @actor_rapid_kernel(%arg0: i32, %arg1: memref<2x147xbf16, #tpu.memory_space<vmem>>, %arg2: memref<147x128xbf16, #tpu.memory_space<vmem>>, %arg3: memref<128x256xf32, #tpu.memory_space<vmem>>, %arg4: memref<3x128xf32, #tpu.memory_space<vmem>>, %arg5: memref<2x128xf32, #tpu.memory_space<vmem>>) attributes {dimension_semantics = [#tpu.dimension_semantics<parallel>], iteration_bounds = array<i64: 1>, scalar_prefetch = 0 : i64, scratch_operands = 0 : i64, tpu.core_type = #tpu.core_type<tc>, window_params = [{transform_indices = @transform_0, window_bounds = array<i64: 2, 147>}, {pipeline_mode = #tpu.pipeline_mode<synchronous>, transform_indices = @transform_1, window_bounds = array<i64: 147, 128>}, {pipeline_mode = #tpu.pipeline_mode<synchronous>, transform_indices = @transform_2, window_bounds = array<i64: 128, 256>}, {pipeline_mode = #tpu.pipeline_mode<synchronous>, transform_indices = @transform_3, window_bounds = array<i64: 3, 128>}, {transform_indices = @transform_4, window_bounds = array<i64: 2, 128>}]} {
    %c0 = arith.constant 0 : index
    %c0_0 = arith.constant 0 : index
    %0 = vector.load %arg1[%c0, %c0_0] : memref<2x147xbf16, #tpu.memory_space<vmem>>, vector<2x147xbf16>
    %c0_1 = arith.constant 0 : index
    %c0_2 = arith.constant 0 : index
    %1 = vector.load %arg2[%c0_1, %c0_2] : memref<147x128xbf16, #tpu.memory_space<vmem>>, vector<147x128xbf16>
    %cst = arith.constant dense<0.000000e+00> : vector<2x128xf32>
    %2 = tpu.matmul %0, %1, %cst {dimension_numbers = #tpu.dot_dimension_numbers<[1], [0], [0], [1], [0, 0, 1, 1], [], []>} : vector<2x147xbf16>, vector<147x128xbf16>, vector<2x128xf32> -> vector<2x128xf32>
    %c0_3 = arith.constant 0 : index
    %c0_4 = arith.constant 0 : index
    %3 = vector.load %arg4[%c0_3, %c0_4] : memref<3x128xf32, #tpu.memory_space<vmem>>, vector<1x128xf32>
    %4 = vector.broadcast %3 : vector<1x128xf32> to vector<2x128xf32>
    %5 = arith.addf %2, %4 : vector<2x128xf32>
    %cst_5 = arith.constant 0.000000e+00 : f32
    %6 = vector.broadcast %cst_5 : f32 to vector<2x128xf32>
    %7 = arith.maximumf %5, %6 : vector<2x128xf32>
    %c0_6 = arith.constant 0 : index
    %c0_7 = arith.constant 0 : index
    %8 = vector.load %arg3[%c0_6, %c0_7] : memref<128x256xf32, #tpu.memory_space<vmem>>, vector<128x128xf32>
    %cst_8 = arith.constant dense<0.000000e+00> : vector<2x128xf32>
    %9 = tpu.matmul %7, %8, %cst_8 {dimension_numbers = #tpu.dot_dimension_numbers<[1], [0], [0], [1], [0, 0, 1, 1], [], []>} : vector<2x128xf32>, vector<128x128xf32>, vector<2x128xf32> -> vector<2x128xf32>
    %c1 = arith.constant 1 : index
    %c0_9 = arith.constant 0 : index
    %10 = vector.load %arg4[%c1, %c0_9] : memref<3x128xf32, #tpu.memory_space<vmem>>, vector<1x128xf32>
    %11 = vector.broadcast %10 : vector<1x128xf32> to vector<2x128xf32>
    %12 = arith.addf %9, %11 : vector<2x128xf32>
    %cst_10 = arith.constant 0.000000e+00 : f32
    %13 = vector.broadcast %cst_10 : f32 to vector<2x128xf32>
    %14 = arith.maximumf %12, %13 : vector<2x128xf32>
    %c0_11 = arith.constant 0 : index
    %c128 = arith.constant 128 : index
    %15 = vector.load %arg3[%c0_11, %c128] : memref<128x256xf32, #tpu.memory_space<vmem>>, vector<128x128xf32>
    %cst_12 = arith.constant dense<0.000000e+00> : vector<2x128xf32>
    %16 = tpu.matmul %14, %15, %cst_12 {dimension_numbers = #tpu.dot_dimension_numbers<[1], [0], [0], [1], [0, 0, 1, 1], [], []>} : vector<2x128xf32>, vector<128x128xf32>, vector<2x128xf32> -> vector<2x128xf32>
    %c2 = arith.constant 2 : index
    %c0_13 = arith.constant 0 : index
    %17 = vector.load %arg4[%c2, %c0_13] : memref<3x128xf32, #tpu.memory_space<vmem>>, vector<1x128xf32>
    %18 = vector.broadcast %17 : vector<1x128xf32> to vector<2x128xf32>
    %19 = arith.addf %16, %18 : vector<2x128xf32>
    %cst_14 = arith.constant dense<0xFF800000> : vector<2xf32>
    %20 = vector.multi_reduction <maximumf>, %19, %cst_14 [1] : vector<2x128xf32> to vector<2xf32>
    %21 = vector.shape_cast %20 : vector<2xf32> to vector<2x1xf32>
    %22 = vector.broadcast %21 : vector<2x1xf32> to vector<2x128xf32>
    %23 = arith.subf %19, %22 : vector<2x128xf32>
    %24 = math.exp %23 : vector<2x128xf32>
    %cst_15 = arith.constant dense<0.000000e+00> : vector<2xf32>
    %25 = vector.multi_reduction <add>, %24, %cst_15 [1] : vector<2x128xf32> to vector<2xf32>
    %26 = vector.shape_cast %25 : vector<2xf32> to vector<2x1xf32>
    %27 = math.log %26 : vector<2x1xf32>
    %28 = vector.broadcast %27 : vector<2x1xf32> to vector<2x128xf32>
    %29 = arith.subf %23, %28 : vector<2x128xf32>
    %c0_16 = arith.constant 0 : index
    %c0_17 = arith.constant 0 : index
    %30 = vector.load %arg5[%c0_16, %c0_17] : memref<2x128xf32, #tpu.memory_space<vmem>>, vector<2x128xf32>
    tpu.vector_store %arg5[%c0_16, %c0_17], %29 {strides = array<i32>} : memref<2x128xf32, #tpu.memory_space<vmem>>, vector<2x128xf32>,
    return
  }
  func.func @transform_0(%arg0: i32) -> (i32, i32) {
    %c0_i32 = arith.constant 0 : i32
    %c0_i32_0 = arith.constant 0 : i32
    return %arg0, %c0_i32 : i32, i32
  }
  func.func @transform_1(%arg0: i32) -> (i32, i32) {
    %c0_i32 = arith.constant 0 : i32
    %c0_i32_0 = arith.constant 0 : i32
    %c0_i32_1 = arith.constant 0 : i32
    return %c0_i32, %c0_i32_0 : i32, i32
  }
  func.func @transform_2(%arg0: i32) -> (i32, i32) {
    %c0_i32 = arith.constant 0 : i32
    %c0_i32_0 = arith.constant 0 : i32
    %c0_i32_1 = arith.constant 0 : i32
    return %c0_i32, %c0_i32_0 : i32, i32
  }
  func.func @transform_3(%arg0: i32) -> (i32, i32) {
    %c0_i32 = arith.constant 0 : i32
    %c0_i32_0 = arith.constant 0 : i32
    %c0_i32_1 = arith.constant 0 : i32
    return %c0_i32, %c0_i32_0 : i32, i32
  }
  func.func @transform_4(%arg0: i32) -> (i32, i32) {
    %c0_i32 = arith.constant 0 : i32
    %c0_i32_0 = arith.constant 0 : i32
    return %arg0, %c0_i32 : i32, i32
  }
}

</mosaic_0001>

<bundles_post_ra>
// kernel: tpu_custom_call.1
= control target key start
LH: loop header
LB: loop body
LE: loop exit
PB: predicated region body
PF: predicated region fallthrough
CT: control target
= control target key end

     0   :  { %9 = vsyncpa [#allocation3], 0  ;;  %s853_s0 = inlined_call_operand.hbm [shape: bf16[2,147], index: 0, kind: input, shape index: {}]   ;;  %s854_s1 = inlined_call_operand.hbm [shape: bf16[147,128], index: 1, kind: input, shape index: {}]   ;;  %s855_s2 = inlined_call_operand.hbm [shape: f32[128,256], index: 2, kind: input, shape index: {}]   ;;  %s856_s3 = inlined_call_operand.vmem [shape: f32[3,128], index: 3, kind: input, shape index: {}]   ;;  %s857_s4 = inlined_call_operand.hbm [shape: f32[2,128], index: 4, kind: output, shape index: {}]  }
   0x1   :  { %10 = vsyncpa [#allocation6], 0 }
   0x2   :  { %11 = vsyncpa [#allocation4], 0  ;;  %s717_s15 = smov [#allocation5]   ;;  %s623_s19 = scalar_lea.hbm %s854_s1, 1216 }
   0x3   :  { %s27_s16 = sshll.u32 %s717_s15, 4  ;;  %p624_p0 = scmp.ne.s32.totalorder %s854_s1, %s623_s19  ;;  %s28_s16 = int_to_ptr.vmem [resolvable:$true] %s27_s16 }
   0x4   :  { %p627_p1 = scmp.lt.u32.totalorder %s623_s19, %s854_s1 }
   0x6   :  { %p629_p2 = pnand %p627_p1, %p624_p0 }
   0x8   :  { %632 = shalt.err (!%p629_p2)
}
   0x9   :  { %s633_s24 = scalar_lea.vmem %s28_s16, 1216  ;;  %p638_p4 = scmp.lt.s32.totalorder %s28_s16, %s28_s16 }
   0xa   :  { %p634_p3 = scmp.ne.s32.totalorder %s28_s16, %s633_s24  ;;  %p639_p5 = scmp.lt.s32.totalorder %s633_s24, %s633_s24 }
   0xc   :  { %p640_p6 = por %p639_p5, %p638_p4 }
   0xe   :  { %p641_p7 = pnand %p640_p6, %p634_p3 }
  0x10   :  { %644 = shalt.err (!%p641_p7)
}
  0x11   :  { %s718_s25 = smov 64   ;;  %s719_s26 = smov 4  }
  0x12   :  { %33 = dma.hbm_to_vmem [thread:$0]  %s854_s1, 1216, %s28_s16, [#allocation6], %s718_s25, %s718_s25, %s719_s26  }
  0x13   :  { %s720_s29 = smov [#allocation2]   ;;  %s721_s5 = smov [#allocation7]  }
  0x14   :  { %s18_s30 = sshll.u32 %s720_s29, 4  ;;  %s39_s6 = sshll.u32 %s721_s5, 4  ;;  %s19_s30 = int_to_ptr.vmem [resolvable:$true] %s18_s30  ;;  %s40_s6 = int_to_ptr.vmem [resolvable:$true] %s39_s6 }
  0x15   :  { %s645_s9 = scalar_lea.hbm %s853_s0, 32 }
  0x16   :  { %p646_p8 = scmp.ne.s32.totalorder %s853_s0, %s645_s9  ;;  %p649_p9 = scmp.lt.u32.totalorder %s645_s9, %s853_s0 }
  0x18   :  { %p651_p10 = pnand %p649_p9, %p646_p8 }
  0x1a   :  { %654 = shalt.err (!%p651_p10)
}
  0x1b   :  { %s655_s1 = scalar_lea.vmem %s19_s30, 32  ;;  %p660_p12 = scmp.lt.s32.totalorder %s19_s30, %s19_s30 }
  0x1c   :  { %p656_p11 = scmp.ne.s32.totalorder %s19_s30, %s655_s1  ;;  %p661_p13 = scmp.lt.s32.totalorder %s655_s1, %s655_s1 }
  0x1e   :  { %p662_p0 = por %p661_p13, %p660_p12 }
  0x20   :  { %p663_p1 = pnand %p662_p0, %p656_p11 }
  0x22   :  { %666 = shalt.err (!%p663_p1)
}
  0x23   :  { %21 = dma.hbm_to_vmem [thread:$0]  %s853_s0, 32, %s19_s30, [#allocation3]  }
  0x24   :  { %s667_s18 = scalar_lea.hbm %s855_s2, 4096 }
  0x25   :  { %p668_p2 = scmp.ne.s32.totalorder %s855_s2, %s667_s18  ;;  %p671_p3 = scmp.lt.u32.totalorder %s667_s18, %s855_s2 }
  0x27   :  { %p673_p4 = pnand %p671_p3, %p668_p2 }
  0x29   :  { %676 = shalt.err (!%p673_p4)
}
  0x2a   :  { %s677_s23 = scalar_lea.vmem %s40_s6, 4096  ;;  %p682_p6 = scmp.lt.s32.totalorder %s40_s6, %s40_s6 }
  0x2b   :  { %p678_p5 = scmp.ne.s32.totalorder %s40_s6, %s677_s23  ;;  %p683_p7 = scmp.lt.s32.totalorder %s677_s23, %s677_s23 }
  0x2d   :  { %p684_p8 = por %p683_p7, %p682_p6 }
  0x2f   :  { %p685_p9 = pnand %p684_p8, %p678_p5 }
  0x31   :  { %688 = shalt.err (!%p685_p9)
}
  0x32   :  { %s722_s0 = smov 256   ;;  %s723_s24 = smov 16  }
  0x33   :  { %45 = dma.hbm_to_vmem [thread:$0]  %s855_s2, 4096, %s40_s6, [#allocation6], %s722_s0, %s722_s0, %s723_s24  }
  0x34   :  { %711 = dma.done.wait [#allocation3], 32  }
  0x35   :  { %712 = vsyncadd [#allocation3], 4294967264 }
  0x36   :  { %713 = dma.done.wait [#allocation6], 5312  }
  0x37   :  { %714 = vsyncadd [#allocation6], 4294961984  ;;  %v724_v0 = vmov 0   ;;  %v725_v1 = vmov 0.0|0.0   ;;  %v609_v2 = vld [vmem:[#allocation5] sm:$0xff]   ;;  %v95_v5 = vlaneseq  ;;  %v610_v6 = vld [vmem:[#allocation5 + $0x8] sm:$0xff]  }
  0x38   :  { %175 = vmatprep.subr.bf16.mxu0 %v724_v0  ;;  %547 = vmatprep.subr.bf16.mxu1 %v725_v1  ;;  %v726_v3 = vmov 1966171168   ;;  %v611_v9 = vld [vmem:[#allocation5 + $0x10] sm:$0xff]   ;;  %v612_v10 = vld [vmem:[#allocation5 + $0x18] sm:$0xff]   ;;  %vm164_vm0 = vcmask 154624   ;;  %v613_v21 = vld [vmem:[#allocation5 + $0x20] sm:$0xff]  }
  0x39   :  { %v93_v4 = vunpack.c.l.s4 %v726_v3  ;;  %176 = vmatpush1.bf16.msra.mxu0 %v609_v2  ;;  %v96_v8 = vshrl.u32 %v95_v5, 7  ;;  %v216_v12 = vld [vmem:[#allocation7] sm:$0xff]  ;;  %v798_v13 = vld.sshfl [vmem:[#allocation2] sm:$0x11 pattern:$0x75316420] }
  0x3a   :  { %177 = vmatprep.subr.bf16.mxu0 %v724_v0  ;;  %v217_v14 = vld [vmem:[#allocation7 + $0x10] sm:$0xff]  ;;  %v218_v15 = vld [vmem:[#allocation7 + $0x20] sm:$0xff]  ;;  %v91_v16 = vcombine.high %v798_v13, %v798_v13  ;;  %vm168_vm1 = vcmask 1040384   ;;  %vm169_vm2 = vcmask 1041408   ;;  %v727_v36 = vmov 65535   ;;  %v308_v52 = vld [vmem:[#allocation7 + $0x8] sm:$0xff] }
  0x3b   :  { %v94_v7 = vunpack.c.0.s8 %v93_v4  ;;  %v548_v17 = vpack.c.bf16 %v217_v14, %v216_v12  ;;  %v219_v18 = vld [vmem:[#allocation7 + $0x30] sm:$0xff]  ;;  %v220_v22 = vld [vmem:[#allocation7 + $0x40] sm:$0xff]  ;;  %v170_v37 = vsel %vm168_vm1, 4294967295, %v727_v36  ;;  %v618_v40 = vld [vmem:[#allocation5 + $0x48] ss:$0 sps:$4 sm:$0x33]  }
  0x3c   :  { %v551_v20 = vpack.c.bf16 %v219_v18, %v218_v15  ;;  %v221_v23 = vld [vmem:[#allocation7 + $0x50] sm:$0xff]  ;;  %v614_v25 = vld [vmem:[#allocation5 + $0x28] sm:$0xff]   ;;  %v615_v29 = vld [vmem:[#allocation5 + $0x30] sm:$0xff]   ;;  %v171_v43 = vsel %vm169_vm2, %v170_v37, 0  ;;  %vm728_vm3 = vmmov 0   ;;  %v729_v50 = vmov 0.0  }
  0x3d   :  { %178 = vmatpush1.bf16.msra.mxu0 %v610_v6  ;;  %v796_v11 = vsub.s32 %v94_v7, %v96_v8  ;;  %549 = vmatpush3.bf16.msra.mxu1 %v548_v17  ;;  %v554_v24 = vpack.c.bf16 %v221_v23, %v220_v22  ;;  %v222_v26 = vld [vmem:[#allocation7 + $0x60] sm:$0xff]  ;;  %v223_v27 = vld [vmem:[#allocation7 + $0x70] sm:$0xff]  ;;  %v173_v45 = vand.u32 %v618_v40, %v171_v43  ;;  %v428_v51 = vld [vmem:[%s856_s3] ss:$0 sm:$0xff]  ;;  %s730_s6 = smov [#allocation8]  }
  0x3e   :  { %179 = vmatprep.subr.bf16.mxu0 %v724_v0  ;;  %550 = vmatprep.subr.bf16.mxu1 %v725_v1  ;;  %v557_v28 = vpack.c.bf16 %v223_v27, %v222_v26  ;;  %v224_v30 = vld [vmem:[#allocation7 + $0x80] sm:$0xff]  ;;  %v225_v31 = vld [vmem:[#allocation7 + $0x90] sm:$0xff]  ;;  %v309_v53 = vld [vmem:[#allocation7 + $0x18] sm:$0xff]  ;;  %s418_s7 = sshll.u32 %s730_s6, 4  ;;  %s419_s7 = int_to_ptr.vmem [resolvable:$true] %s418_s7 }
  0x3f   :  { %v105_v19 = vrot.slane %v91_v16, %v796_v11  ;;  %v560_v32 = vpack.c.bf16 %v225_v31, %v224_v30  ;;  %v616_v33 = vld [vmem:[#allocation5 + $0x38] sm:$0xff]   ;;  %v226_v34 = vld [vmem:[#allocation7 + $0xa0] sm:$0xff]  ;;  %v617_v38 = vld [vmem:[#allocation5 + $0x40] sm:$0xff]   ;;  %v98_v46 = vrot.slane %v798_v13, %v796_v11  ;;  %509 = vmatprep.mubr.msk.f32.mxu1 %vm728_vm3, %v729_v50  ;;  %v572_v58 = vpack.c.bf16 %v309_v53, %v308_v52  ;;  %p694_p11 = scmp.lt.s32.totalorder %s419_s7, %s419_s7 }
  0x40   :  { %v227_v35 = vld [vmem:[#allocation7 + $0xb0] sm:$0xff]  ;;  %v228_v41 = vld [vmem:[#allocation7 + $0xc0] sm:$0xff]  ;;  %v310_v61 = vld [vmem:[#allocation7 + $0x28] sm:$0xff] }
  0x41   :  { %180 = vmatpush1.bf16.msra.mxu0 %v611_v9  ;;  %440 = vmatprep.mubr.msk.bf16.mxu0 %vm164_vm0, %v105_v19  ;;  %v563_v39 = vpack.c.bf16 %v227_v35, %v226_v34  ;;  %v229_v42 = vld [vmem:[#allocation7 + $0xd0] sm:$0xff]  ;;  %v230_v47 = vld [vmem:[#allocation7 + $0xe0] sm:$0xff]  ;;  %v311_v62 = vld [vmem:[#allocation7 + $0x38] sm:$0xff] }
  0x42   :  { %181 = vmatprep.subr.bf16.mxu0 %v724_v0  ;;  %552 = vmatpush3.bf16.msra.mxu1 %v551_v20  ;;  %v566_v44 = vpack.c.bf16 %v229_v42, %v228_v41  ;;  %v231_v48 = vld [vmem:[#allocation7 + $0xf0] sm:$0xff]  ;;  %v575_v63 = vpack.c.bf16 %v311_v62, %v310_v61  ;;  %v313_v2 = vld [vmem:[#allocation7 + $0x58] sm:$0xff]  ;;  %v314_v4 = vld [vmem:[#allocation7 + $0x68] sm:$0xff] }
  0x43   :  { %553 = vmatprep.subr.bf16.mxu1 %v725_v1  ;;  %v569_v49 = vpack.c.bf16 %v231_v48, %v230_v47  ;;  %v315_v5 = vld [vmem:[#allocation7 + $0x78] sm:$0xff]  ;;  %v316_v7 = vld [vmem:[#allocation7 + $0x88] sm:$0xff] }
  0x44   :  { %v581_v6 = vpack.c.bf16 %v315_v5, %v314_v4  ;;  %v317_v8 = vld [vmem:[#allocation7 + $0x98] sm:$0xff]  ;;  %v320_v13 = vld [vmem:[#allocation7 + $0xc8] sm:$0xff] }
  0x45   :  { %182 = vmatpush1.bf16.msra.mxu0 %v612_v10  ;;  %v584_v9 = vpack.c.bf16 %v317_v8, %v316_v7  ;;  %v318_v10 = vld [vmem:[#allocation7 + $0xa8] sm:$0xff]  ;;  %v319_v11 = vld [vmem:[#allocation7 + $0xb8] sm:$0xff] }
  0x46   :  { %183 = vmatprep.subr.bf16.mxu0 %v724_v0  ;;  %555 = vmatpush3.bf16.msra.mxu1 %v554_v24  ;;  %v587_v12 = vpack.c.bf16 %v319_v11, %v318_v10  ;;  %v321_v14 = vld [vmem:[#allocation7 + $0xd8] sm:$0xff]  ;;  %v322_v16 = vld [vmem:[#allocation7 + $0xe8] sm:$0xff] }
  0x47   :  { %556 = vmatprep.subr.bf16.mxu1 %v725_v1  ;;  %v590_v15 = vpack.c.bf16 %v321_v14, %v320_v13  ;;  %v323_v17 = vld [vmem:[#allocation7 + $0xf8] sm:$0xff]  ;;  %v441_v19 = vld [vmem:[%s856_s3 + $0x1] ss:$0 sm:$0xff]  ;;  %v442_v24 = vld [vmem:[%s856_s3 + $0x2] ss:$0 sm:$0xff]  ;;  %s689_s3 = scalar_lea.vmem %s419_s7, 32 }
  0x48   :  { %v593_v18 = vpack.c.bf16 %v323_v17, %v322_v16  ;;  %p690_p10 = scmp.ne.s32.totalorder %s419_s7, %s689_s3  ;;  %p695_p12 = scmp.lt.s32.totalorder %s689_s3, %s689_s3 }
  0x49   :  { %184 = vmatpush1.bf16.msra.mxu0 %v613_v21 }
  0x4a   :  { %185 = vmatprep.subr.bf16.mxu0 %v724_v0  ;;  %558 = vmatpush3.bf16.msra.mxu1 %v557_v28  ;;  %p696_p13 = por %p695_p12, %p694_p11 }
  0x4b   :  { %559 = vmatprep.subr.bf16.mxu1 %v725_v1 }
  0x4c   :  { %p697_p0 = pnand %p696_p13, %p690_p10 }
  0x4d   :  { %186 = vmatpush1.bf16.msra.mxu0 %v614_v25 }
  0x4e   :  { %187 = vmatprep.subr.bf16.mxu0 %v724_v0  ;;  %561 = vmatpush3.bf16.msra.mxu1 %v560_v32 }
  0x4f   :  { %562 = vmatprep.subr.bf16.mxu1 %v725_v1 }
  0x51   :  { %188 = vmatpush1.bf16.msra.mxu0 %v615_v29 }
  0x52   :  { %189 = vmatprep.subr.bf16.mxu0 %v724_v0  ;;  %564 = vmatpush3.bf16.msra.mxu1 %v563_v39 }
  0x53   :  { %565 = vmatprep.subr.bf16.mxu1 %v725_v1 }
  0x55   :  { %190 = vmatpush1.bf16.msra.mxu0 %v616_v33 }
  0x56   :  { %191 = vmatprep.subr.bf16.mxu0 %v724_v0  ;;  %567 = vmatpush3.bf16.msra.mxu1 %v566_v44 }
  0x57   :  { %568 = vmatprep.subr.bf16.mxu1 %v725_v1 }
  0x59   :  { %192 = vmatpush1.bf16.msra.mxu0 %v617_v38 }
  0x5a   :  { %193 = vmatprep.subr.bf16.mxu0 %v724_v0  ;;  %570 = vmatpush3.bf16.msra.mxu1 %v569_v49  ;;  %v312_v0 = vld [vmem:[#allocation7 + $0x48] sm:$0xff] }
  0x5b   :  { %571 = vmatprep.subr.bf16.mxu1 %v725_v1  ;;  %v578_v3 = vpack.c.bf16 %v313_v2, %v312_v0 }
  0x5d   :  { %194 = vmatpush1.bf16.msra.mxu0 %v173_v45 }
  0x60   :  { %208 = vmatmul.mubr.bf16.vlgmr.msra.gmra.mrb[0].mxu0 %v98_v46 }
 0x133   :  { %v209_v54 = vpop.f32.mrb[0].mxu0 }
 0x134   :  { %v210_v55 = vadd.f32 %v428_v51, %v209_v54  ;;  %v211_v56 = vpop.f32.mrb[1].mxu0 }
 0x135   :  { %v212_v57 = vpop.f32.mrb[2].mxu0 }
 0x136   :  { %v215_v59 = vmax.f32 %v210_v55, 0.0  ;;  %v213_v60 = vpop.f32.mrb[3].mxu0 }
 0x138   :  { %510 = vmatmul.mubr.f32.vlgmr.msra.gmra.mrb[0].mxu1 %v215_v59 }
 0x139   :  { %573 = vmatpush3.bf16.msra.mxu1 %v572_v58  ;;  %544 = vmatprep.mubr.msk.f32.mxu1 %vm728_vm3, %v729_v50 }
 0x13a   :  { %574 = vmatprep.subr.bf16.mxu1 %v725_v1 }
 0x13d   :  { %576 = vmatpush3.bf16.msra.mxu1 %v575_v63 }
 0x13e   :  { %577 = vmatprep.subr.bf16.mxu1 %v725_v1 }
 0x141   :  { %579 = vmatpush3.bf16.msra.mxu1 %v578_v3 }
 0x142   :  { %580 = vmatprep.subr.bf16.mxu1 %v725_v1 }
 0x145   :  { %582 = vmatpush3.bf16.msra.mxu1 %v581_v6 }
 0x146   :  { %583 = vmatprep.subr.bf16.mxu1 %v725_v1 }
 0x149   :  { %585 = vmatpush3.bf16.msra.mxu1 %v584_v9 }
 0x14a   :  { %586 = vmatprep.subr.bf16.mxu1 %v725_v1 }
 0x14d   :  { %588 = vmatpush3.bf16.msra.mxu1 %v587_v12 }
 0x14e   :  { %589 = vmatprep.subr.bf16.mxu1 %v725_v1 }
 0x151   :  { %591 = vmatpush3.bf16.msra.mxu1 %v590_v15 }
 0x152   :  { %592 = vmatprep.subr.bf16.mxu1 %v725_v1 }
 0x155   :  { %594 = vmatpush3.bf16.msra.mxu1 %v593_v18 }
 0x20b   :  { %v303_v20 = vpop.f32.mrb[0].mxu1 }
 0x20c   :  { %v304_v21 = vadd.f32 %v441_v19, %v303_v20  ;;  %v511_v22 = vpop.f32.mrb[1].mxu1 }
 0x20e   :  { %v307_v23 = vmax.f32 %v304_v21, 0.0 }
 0x210   :  { %545 = vmatmul.mubr.f32.vlgmr.msra.gmra.mrb[2].mxu1 %v307_v23 }
 0x2e3   :  { %v395_v25 = vpop.f32.mrb[2].mxu1 }
 0x2e4   :  { %v396_v26 = vadd.f32 %v442_v24, %v395_v25  ;;  %v546_v1 = vpop.f32.mrb[3].mxu1 }
 0x2e6   :  { %v399_v27 = vsel %vm169_vm2, %v396_v26, -inf }
 0x2e7   :  { %400 = vmax.xlane.f32.xlu0 %v399_v27 }
 0x374   :  { %v401_v28 = vpop.xlane.xlu0 %400 }
 0x375   :  { %v402_v29 = vsub.f32 %v396_v26, %v401_v28 }
 0x377   :  { %v403_v30 = vmul.f32 1.442695, %v402_v29 }
 0x379   :  { %619 = vpow2.f32 %v403_v30 }
 0x383   :  { %v620_v31 = vpop.eup %619 }
 0x384   :  { %v405_v32 = vsel %vm169_vm2, %v620_v31, 0.0 }
 0x385   :  { %406 = vadd.xlane.f32.xlu0 %v405_v32 }
 0x412   :  { %v407_v33 = vpop.xlane.xlu0 %406 }
 0x413   :  { %621 = vlog2.f32 %v407_v33 }
 0x41d   :  { %v622_v34 = vpop.eup %621 }
 0x41e   :  { %v409_v35 = vmul.f32 0.6931472, %v622_v34 }
 0x420   :  { %v410_v36 = vsub.f32 %v402_v29, %v409_v35 }
 0x422   :  { %411 = vst [vmem:[#allocation8] sm:$0x3] %v410_v36 }
 0x423   :  { %700 = shalt.err (!%p697_p0)
}
 0x424   :  { %s701_s10 = scalar_lea.hbm %s857_s4, 32 }
 0x425   :  { %p702_p1 = scmp.ne.s32.totalorder %s857_s4, %s701_s10  ;;  %p705_p2 = scmp.lt.u32.totalorder %s701_s10, %s857_s4 }
 0x427   :  { %p707_p3 = pnand %p705_p2, %p702_p1 }
 0x429   :  { %710 = shalt.err (!%p707_p3)
}
 0x42a   :  { %421 = dma.vmem_to_hbm [thread:$0]  %s419_s7, 32, %s857_s4, [#allocation4]  }
 0x42b   :  { %715 = dma.done.wait [#allocation4], 32  }
 0x42c   :  { %716 = vsyncadd [#allocation4], 4294967264 }
 0x42d   :  { %425 = vsyncpa [#allocation3], 1 }
 0x42e   :  { %426 = vsyncpa [#allocation6], 1 }
 0x42f   :  { %427 = vsyncpa [#allocation4], 1 }

</bundles_post_ra>
